<compile_context>
chip_gen: v7x
topology: tpu7x:2x2x1
jax: 0.10.0
libtpu: 0.0.40
codegen_flags: <defaults>
</compile_context>

<pallas_src>
import jax
import jax.numpy as jnp
from jax.experimental import pallas as pl
from jax.experimental.pallas import tpu as pltpu

_LANES = 128


# --------------------------------------------------------------------------- #
# Kernel
# --------------------------------------------------------------------------- #
def _make_kernel(n_heads: int, n_actions: int):
    """One batch tile: three lane-dense matmuls + per-head dueling epilogue."""
    n_ap1 = n_actions + 1

    def kernel(s_ref, w1_ref, b1_ref, w2_ref, b2_ref, wva_ref, bva_ref, q_ref):
        cdt = w1_ref.dtype                       # MXU input dtype (f32 here)

        # Layer 1: (tB, H*s_dim) @ (H*s_dim, Hp)   [block-diagonal weights]
        x = jnp.dot(s_ref[...].astype(cdt), w1_ref[...],
                    preferred_element_type=jnp.float32) + b1_ref[...]
        x = jnp.maximum(x, 0.0)                  # (tB, Hp) f32

        # Layer 2: (tB, Hp) @ (Hp, Hp)
        x = jnp.dot(x.astype(cdt), w2_ref[...],
                    preferred_element_type=jnp.float32) + b2_ref[...]
        x = jnp.maximum(x, 0.0)                  # (tB, Hp) f32

        # Fused [A | V] heads: (tB, Hp) @ (Hp, H*(nA+1))
        va = jnp.dot(x.astype(cdt), wva_ref[...],
                     preferred_element_type=jnp.float32) + bva_ref[...]

        # Dueling epilogue: static lane slices per head, direct stores
        # (no concat, short live ranges).  Mean over true action columns only.
        for h in range(n_heads):
            a0 = h * n_ap1
            A = va[:, a0:a0 + n_actions]                    # (tB, nA)
            V = va[:, a0 + n_actions:a0 + n_ap1]            # (tB, 1)
            q = V + A - jnp.mean(A, axis=1, keepdims=True)
            q_ref[:, h * n_actions:(h + 1) * n_actions] = q.astype(q_ref.dtype)

    return kernel


# --------------------------------------------------------------------------- #
# Wrapper-side one-time parameter packing
# --------------------------------------------------------------------------- #
def _round_up(x: int, m: int) -> int:
    return ((x + m - 1) // m) * m


def _block_diag(w):
    """(H, K, N) per-head weights -> (H*K, H*N) block-diagonal matrix."""
    H, K, N = w.shape
    out = jnp.zeros((H * K, H * N), w.dtype)
    for h in range(H):
        out = out.at[h * K:(h + 1) * K, h * N:(h + 1) * N].set(w[h])
    return out


def _pad_to(a, rows, cols):
    """Zero-pad a 2-D array up to (rows, cols)."""
    return jnp.pad(a, ((0, rows - a.shape[0]), (0, cols - a.shape[1])))


def pack_params(params, compute_dtype=jnp.float32):
    """One-time packing: fuse Wv into Wa, build block-diagonal head-fused
    weights, zero-pad the fused hidden width to a multiple of 128 lanes, and
    cast matmul weights to the MXU input dtype.  Biases stay f32 (epilogue
    math is f32).  Zero padding is exact: relu(0)=0 and padded weight
    rows/cols are zero, so padded channels never contribute."""
    w1, b1, w2, b2, wv, bv, wa, ba = params
    H, s_dim, hidden = w1.shape
    n_actions = wa.shape[2]
    n_ap1 = n_actions + 1

    fused_in = H * s_dim
    fused_hidden = H * hidden
    hp = _round_up(fused_hidden, _LANES)        # lane-dense intermediate width
    fused_va = H * n_ap1

    wva = jnp.concatenate([wa, wv], axis=2)     # (H, hidden, nA+1)
    bva = jnp.concatenate([ba, bv], axis=1)     # (H, nA+1)

    w1_bd = _pad_to(_block_diag(w1), fused_in, hp)          # (H*s_dim, Hp)
    w2_bd = _pad_to(_block_diag(w2), hp, hp)                # (Hp, Hp)
    wva_bd = _pad_to(_block_diag(wva), hp, fused_va)        # (Hp, H*(nA+1))

    b1_f = _pad_to(b1.reshape(1, fused_hidden), 1, hp)
    b2_f = _pad_to(b2.reshape(1, fused_hidden), 1, hp)
    bva_f = bva.reshape(1, fused_va)

    return (w1_bd.astype(compute_dtype), b1_f.astype(jnp.float32),
            w2_bd.astype(compute_dtype), b2_f.astype(jnp.float32),
            wva_bd.astype(compute_dtype), bva_f.astype(jnp.float32))


# --------------------------------------------------------------------------- #
# VMEM-aware tiling
# --------------------------------------------------------------------------- #
def _vmem_limit_bytes() -> int:
    """Per-generation VMEM budget with headroom (96 MiB-class on v5e/v6e,
    ~48 MiB on v7x); conservative fallback when no TPU is attached."""
    try:
        cap = int(pltpu.get_tpu_info().vmem_capacity_bytes)
    except Exception:
        cap = 64 * 1024 * 1024
    return min(cap * 3 // 4, 100 * 1024 * 1024)


def _pick_batch_tile(batch: int, row_bytes: int, resident_bytes: int,
                     vmem_limit: int) -> int:
    """Largest sublane-aligned DIVISOR of batch whose per-tile working set
    fits the VMEM budget left after the resident weights.  Prefer >=4 grid
    steps (>=2 per v7x TensorCore) so the batch pipeline stays double
    buffered; fall back to >=2 steps, then a single step for tiny batches.
    Only divisors are returned, so the pl.cdiv grid is exact (no padded
    garbage rows ever reach the matmuls)."""
    budget = max(vmem_limit - resident_bytes, 2 * 1024 * 1024)
    cap = max(budget // max(row_bytes, 1), 8)
    fallback = None
    for t in (1024, 512, 256, 128, 64, 32, 16, 8):
        if t > cap or batch % t != 0:
            continue
        steps = batch // t
        if steps >= 4:
            return t
        if fallback is None and steps >= 2:
            fallback = t
    return fallback if fallback is not None else batch


# --------------------------------------------------------------------------- #
# Forward
# --------------------------------------------------------------------------- #
def multihead_dueling_q_forward(s, packed_params):
    """s: (B, n_heads, s_dim).  Returns Q: (B, n_heads, n_actions) float32."""
    w1, b1, w2, b2, wva, bva = packed_params
    B, H, s_dim = s.shape
    fused_in = H * s_dim
    hp = w1.shape[1]                       # padded fused hidden width
    fused_va = wva.shape[1]                # H * (n_actions + 1)
    n_ap1 = fused_va // H
    n_actions = n_ap1 - 1
    fused_out = H * n_actions

    # Contiguous (free) reshape: lane-dense 2-D activation slab.
    s_flat = s.reshape(B, fused_in)

    vmem_limit = _vmem_limit_bytes()
    # Resident weights are double-buffered by the default BlockSpec pipeline
    # even though their block index never changes; budget for 2x.
    resident = 2 * sum(int(a.size) * a.dtype.itemsize
                       for a in (w1, b1, w2, b2, wva, bva))
    # Per-batch-row VMEM: double-buffered s and q blocks + live f32 intermediates.
    row_bytes = (2 * fused_in * s_flat.dtype.itemsize
                 + 2 * fused_out * 4
                 + 3 * hp * 4)
    tB = _pick_batch_tile(B, row_bytes, resident, vmem_limit)
    grid = (pl.cdiv(B, tB),)               # tB divides B -> exact grid

    q_flat = pl.pallas_call(
        _make_kernel(H, n_actions),
        out_shape=jax.ShapeDtypeStruct((B, fused_out), jnp.float32),
        grid_spec=pltpu.PrefetchScalarGridSpec(
            num_scalar_prefetch=0,
            grid=grid,
            in_specs=[
                # Activations: tile the batch axis only (lane-dense last dim).
                pl.BlockSpec((tB, fused_in), lambda i: (i, 0)),
                # Head-fused weights/biases: constant index_map -> fetched
                # once, VMEM-resident across all batch tiles.
                pl.BlockSpec((fused_in, hp), lambda i: (0, 0)),
                pl.BlockSpec((1, hp), lambda i: (0, 0)),
                pl.BlockSpec((hp, hp), lambda i: (0, 0)),
                pl.BlockSpec((1, hp), lambda i: (0, 0)),
                pl.BlockSpec((hp, fused_va), lambda i: (0, 0)),
                pl.BlockSpec((1, fused_va), lambda i: (0, 0)),
            ],
            out_specs=pl.BlockSpec((tB, fused_out), lambda i: (i, 0)),
        ),
        compiler_params=pltpu.CompilerParams(
            dimension_semantics=("parallel",),
            vmem_limit_bytes=vmem_limit,
        ),
    )(s_flat, w1, b1, w2, b2, wva, bva)

    # Contiguous split of the last dim — no transpose, no extra HBM pass.
    return q_flat.reshape(B, H, n_actions)


# --------------------------------------------------------------------------- #
# Reference / init / self-test
# --------------------------------------------------------------------------- #
def init_params(key, n_heads, s_dim, n_actions, hidden_dim):
    """Deterministic synthetic init mirroring the module's parameter shapes."""
    ks = jax.random.split(key, 4)
    w1 = jax.random.normal(ks[0], (n_heads, s_dim, hidden_dim), jnp.float32) * 0.1
    b1 = jnp.zeros((n_heads, hidden_dim), jnp.float32)
    w2 = jax.random.normal(ks[1], (n_heads, hidden_dim, hidden_dim), jnp.float32) * 0.1
    b2 = jnp.zeros((n_heads, hidden_dim), jnp.float32)
    # lV / lA: small gain (orthogonal 0.01 in the original), zero bias.
    wv = jax.random.normal(ks[2], (n_heads, hidden_dim, 1), jnp.float32) * 0.01
    bv = jnp.zeros((n_heads, 1), jnp.float32)
    wa = jax.random.normal(ks[3], (n_heads, hidden_dim, n_actions), jnp.float32) * 0.01
    ba = jnp.zeros((n_heads, n_actions), jnp.float32)
    return (w1, b1, w2, b2, wv, bv, wa, ba)


def reference_forward(s, params):
    """Pure-JAX f32 reference with the original module's math."""
    w1, b1, w2, b2, wv, bv, wa, ba = params

    def pdot(x, w):
        return jnp.einsum('bhi,hio->bho', x, w,
                          preferred_element_type=jnp.float32)

    x = jax.nn.relu(pdot(s, w1) + b1[None])
    x = jax.nn.relu(pdot(x, w2) + b2[None])
    V = pdot(x, wv) + bv[None]
    A = pdot(x, wa) + ba[None]
    return V + A - A.mean(axis=2, keepdims=True)


if __name__ == "__main__":
    B, n_heads, s_dim, hidden_dim, n_actions = 16, 2, 16, 32, 4

    key = jax.random.PRNGKey(0)
    k_s, k_p = jax.random.split(key)
    s = jax.random.normal(k_s, (B, n_heads, s_dim), jnp.float32)
    params = init_params(k_p, n_heads, s_dim, n_actions, hidden_dim)

    # f32 everywhere: exact module semantics.  (bf16 MXU-input packing is
    # available via pack_params(..., jnp.bfloat16) on real TPUs, but is not
    # exercised here because the sandbox runtime rejects BF16xBF16=F32 dots.)
    packed = pack_params(params, jnp.float32)

    fwd = jax.jit(multihead_dueling_q_forward)
    q = jax.block_until_ready(fwd(s, packed))
    q_ref = reference_forward(s, params)

    assert q.shape == (B, n_heads, n_actions)
    assert jnp.allclose(q, q_ref, atol=1e-5, rtol=1e-5)

    print("KERNEL_OK")
</pallas_src>

<mosaic_0001>
module attributes {stable_mosaic.version = 11 : i64} {
  func.func @kernel(%arg0: i32, %arg1: memref<8x32xf32, #tpu.memory_space<vmem>>, %arg2: memref<32x128xf32, #tpu.memory_space<vmem>>, %arg3: memref<1x128xf32, #tpu.memory_space<vmem>>, %arg4: memref<128x128xf32, #tpu.memory_space<vmem>>, %arg5: memref<1x128xf32, #tpu.memory_space<vmem>>, %arg6: memref<128x10xf32, #tpu.memory_space<vmem>>, %arg7: memref<1x10xf32, #tpu.memory_space<vmem>>, %arg8: memref<8x8xf32, #tpu.memory_space<vmem>>) attributes {dimension_semantics = [#tpu.dimension_semantics<parallel>], iteration_bounds = array<i64: 2>, scalar_prefetch = 0 : i64, scratch_operands = 0 : i64, tpu.core_type = #tpu.core_type<tc>, window_params = [{transform_indices = @transform_0, window_bounds = array<i64: 8, 32>}, {pipeline_mode = #tpu.pipeline_mode<synchronous>, transform_indices = @transform_1, window_bounds = array<i64: 32, 128>}, {pipeline_mode = #tpu.pipeline_mode<synchronous>, transform_indices = @transform_2, window_bounds = array<i64: 1, 128>}, {pipeline_mode = #tpu.pipeline_mode<synchronous>, transform_indices = @transform_3, window_bounds = array<i64: 128, 128>}, {pipeline_mode = #tpu.pipeline_mode<synchronous>, transform_indices = @transform_4, window_bounds = array<i64: 1, 128>}, {pipeline_mode = #tpu.pipeline_mode<synchronous>, transform_indices = @transform_5, window_bounds = array<i64: 128, 10>}, {pipeline_mode = #tpu.pipeline_mode<synchronous>, transform_indices = @transform_6, window_bounds = array<i64: 1, 10>}, {transform_indices = @transform_7, window_bounds = array<i64: 8, 8>}]} {
    %c0 = arith.constant 0 : index
    %c0_0 = arith.constant 0 : index
    %0 = vector.load %arg1[%c0, %c0_0] : memref<8x32xf32, #tpu.memory_space<vmem>>, vector<8x32xf32>
    %c0_1 = arith.constant 0 : index
    %c0_2 = arith.constant 0 : index
    %1 = vector.load %arg2[%c0_1, %c0_2] : memref<32x128xf32, #tpu.memory_space<vmem>>, vector<32x128xf32>
    %cst = arith.constant dense<0.000000e+00> : vector<8x128xf32>
    %2 = tpu.matmul %0, %1, %cst {dimension_numbers = #tpu.dot_dimension_numbers<[1], [0], [0], [1], [0, 0, 1, 1], [], []>} : vector<8x32xf32>, vector<32x128xf32>, vector<8x128xf32> -> vector<8x128xf32>
    %c0_3 = arith.constant 0 : index
    %c0_4 = arith.constant 0 : index
    %3 = vector.load %arg3[%c0_3, %c0_4] : memref<1x128xf32, #tpu.memory_space<vmem>>, vector<1x128xf32>
    %4 = vector.broadcast %3 : vector<1x128xf32> to vector<8x128xf32>
    %5 = arith.addf %2, %4 : vector<8x128xf32>
    %cst_5 = arith.constant 0.000000e+00 : f32
    %6 = vector.broadcast %cst_5 : f32 to vector<8x128xf32>
    %7 = arith.maximumf %5, %6 : vector<8x128xf32>
    %c0_6 = arith.constant 0 : index
    %c0_7 = arith.constant 0 : index
    %8 = vector.load %arg4[%c0_6, %c0_7] : memref<128x128xf32, #tpu.memory_space<vmem>>, vector<128x128xf32>
    %cst_8 = arith.constant dense<0.000000e+00> : vector<8x128xf32>
    %9 = tpu.matmul %7, %8, %cst_8 {dimension_numbers = #tpu.dot_dimension_numbers<[1], [0], [0], [1], [0, 0, 1, 1], [], []>} : vector<8x128xf32>, vector<128x128xf32>, vector<8x128xf32> -> vector<8x128xf32>
    %c0_9 = arith.constant 0 : index
    %c0_10 = arith.constant 0 : index
    %10 = vector.load %arg5[%c0_9, %c0_10] : memref<1x128xf32, #tpu.memory_space<vmem>>, vector<1x128xf32>
    %11 = vector.broadcast %10 : vector<1x128xf32> to vector<8x128xf32>
    %12 = arith.addf %9, %11 : vector<8x128xf32>
    %cst_11 = arith.constant 0.000000e+00 : f32
    %13 = vector.broadcast %cst_11 : f32 to vector<8x128xf32>
    %14 = arith.maximumf %12, %13 : vector<8x128xf32>
    %c0_12 = arith.constant 0 : index
    %c0_13 = arith.constant 0 : index
    %15 = vector.load %arg6[%c0_12, %c0_13] : memref<128x10xf32, #tpu.memory_space<vmem>>, vector<128x10xf32>
    %cst_14 = arith.constant dense<0.000000e+00> : vector<8x10xf32>
    %16 = tpu.matmul %14, %15, %cst_14 {dimension_numbers = #tpu.dot_dimension_numbers<[1], [0], [0], [1], [0, 0, 1, 1], [], []>} : vector<8x128xf32>, vector<128x10xf32>, vector<8x10xf32> -> vector<8x10xf32>
    %c0_15 = arith.constant 0 : index
    %c0_16 = arith.constant 0 : index
    %17 = vector.load %arg7[%c0_15, %c0_16] : memref<1x10xf32, #tpu.memory_space<vmem>>, vector<1x10xf32>
    %18 = vector.broadcast %17 : vector<1x10xf32> to vector<8x10xf32>
    %19 = arith.addf %16, %18 : vector<8x10xf32>
    %20 = vector.extract_strided_slice %19 {offsets = [0, 0], sizes = [8, 4], strides = [1, 1]} : vector<8x10xf32> to vector<8x4xf32>
    %21 = vector.extract_strided_slice %19 {offsets = [0, 4], sizes = [8, 1], strides = [1, 1]} : vector<8x10xf32> to vector<8x1xf32>
    %22 = vector.broadcast %21 : vector<8x1xf32> to vector<8x4xf32>
    %23 = arith.addf %22, %20 : vector<8x4xf32>
    %cst_17 = arith.constant dense<0.000000e+00> : vector<8xf32>
    %24 = vector.multi_reduction <add>, %20, %cst_17 [1] : vector<8x4xf32> to vector<8xf32>
    %25 = vector.shape_cast %24 : vector<8xf32> to vector<8x1xf32>
    %cst_18 = arith.constant 4.000000e+00 : f32
    %26 = vector.broadcast %cst_18 : f32 to vector<8x1xf32>
    %27 = arith.divf %25, %26 : vector<8x1xf32>
    %28 = vector.broadcast %27 : vector<8x1xf32> to vector<8x4xf32>
    %29 = arith.subf %23, %28 : vector<8x4xf32>
    %c0_19 = arith.constant 0 : index
    %c0_20 = arith.constant 0 : index
    %30 = vector.load %arg8[%c0_19, %c0_20] : memref<8x8xf32, #tpu.memory_space<vmem>>, vector<8x4xf32>
    tpu.vector_store %arg8[%c0_19, %c0_20], %29 {strides = array<i32>} : memref<8x8xf32, #tpu.memory_space<vmem>>, vector<8x4xf32>,
    %31 = vector.extract_strided_slice %19 {offsets = [0, 5], sizes = [8, 4], strides = [1, 1]} : vector<8x10xf32> to vector<8x4xf32>
    %32 = vector.extract_strided_slice %19 {offsets = [0, 9], sizes = [8, 1], strides = [1, 1]} : vector<8x10xf32> to vector<8x1xf32>
    %33 = vector.broadcast %32 : vector<8x1xf32> to vector<8x4xf32>
    %34 = arith.addf %33, %31 : vector<8x4xf32>
    %cst_21 = arith.constant dense<0.000000e+00> : vector<8xf32>
    %35 = vector.multi_reduction <add>, %31, %cst_21 [1] : vector<8x4xf32> to vector<8xf32>
    %36 = vector.shape_cast %35 : vector<8xf32> to vector<8x1xf32>
    %cst_22 = arith.constant 4.000000e+00 : f32
    %37 = vector.broadcast %cst_22 : f32 to vector<8x1xf32>
    %38 = arith.divf %36, %37 : vector<8x1xf32>
    %39 = vector.broadcast %38 : vector<8x1xf32> to vector<8x4xf32>
    %40 = arith.subf %34, %39 : vector<8x4xf32>
    %c0_23 = arith.constant 0 : index
    %c4 = arith.constant 4 : index
    %41 = vector.load %arg8[%c0_23, %c4] : memref<8x8xf32, #tpu.memory_space<vmem>>, vector<8x4xf32>
    tpu.vector_store %arg8[%c0_23, %c4], %40 {strides = array<i32>} : memref<8x8xf32, #tpu.memory_space<vmem>>, vector<8x4xf32>,
    return
  }
  func.func @transform_0(%arg0: i32) -> (i32, i32) {
    %c0_i32 = arith.constant 0 : i32
    %c0_i32_0 = arith.constant 0 : i32
    return %arg0, %c0_i32 : i32, i32
  }
  func.func @transform_1(%arg0: i32) -> (i32, i32) {
    %c0_i32 = arith.constant 0 : i32
    %c0_i32_0 = arith.constant 0 : i32
    %c0_i32_1 = arith.constant 0 : i32
    return %c0_i32, %c0_i32_0 : i32, i32
  }
  func.func @transform_2(%arg0: i32) -> (i32, i32) {
    %c0_i32 = arith.constant 0 : i32
    %c0_i32_0 = arith.constant 0 : i32
    %c0_i32_1 = arith.constant 0 : i32
    return %c0_i32, %c0_i32_0 : i32, i32
  }
  func.func @transform_3(%arg0: i32) -> (i32, i32) {
    %c0_i32 = arith.constant 0 : i32
    %c0_i32_0 = arith.constant 0 : i32
    %c0_i32_1 = arith.constant 0 : i32
    return %c0_i32, %c0_i32_0 : i32, i32
  }
  func.func @transform_4(%arg0: i32) -> (i32, i32) {
    %c0_i32 = arith.constant 0 : i32
    %c0_i32_0 = arith.constant 0 : i32
    %c0_i32_1 = arith.constant 0 : i32
    return %c0_i32, %c0_i32_0 : i32, i32
  }
  func.func @transform_5(%arg0: i32) -> (i32, i32) {
    %c0_i32 = arith.constant 0 : i32
    %c0_i32_0 = arith.constant 0 : i32
    %c0_i32_1 = arith.constant 0 : i32
    return %c0_i32, %c0_i32_0 : i32, i32
  }
  func.func @transform_6(%arg0: i32) -> (i32, i32) {
    %c0_i32 = arith.constant 0 : i32
    %c0_i32_0 = arith.constant 0 : i32
    %c0_i32_1 = arith.constant 0 : i32
    return %c0_i32, %c0_i32_0 : i32, i32
  }
  func.func @transform_7(%arg0: i32) -> (i32, i32) {
    %c0_i32 = arith.constant 0 : i32
    %c0_i32_0 = arith.constant 0 : i32
    return %arg0, %c0_i32 : i32, i32
  }
}

</mosaic_0001>

<bundles_post_ra>
// kernel: multihead_dueling_q_forward.1
= control target key start
LH: loop header
LB: loop body
LE: loop exit
PB: predicated region body
PF: predicated region fallthrough
CT: control target
= control target key end

     0   :  { %s894_s24 = smov 0   ;;  %s1059_s0 = inlined_call_operand.vmem [shape: f32[16,32], index: 0, kind: input, shape index: {}]   ;;  %s1060_s1 = inlined_call_operand.vmem [shape: f32[32,128], index: 1, kind: input, shape index: {}]   ;;  %s1061_s2 = inlined_call_operand.vmem [shape: f32[1,128], index: 2, kind: input, shape index: {}]   ;;  %s1062_s3 = inlined_call_operand.vmem [shape: f32[128,128], index: 3, kind: input, shape index: {}]   ;;  %s1063_s4 = inlined_call_operand.vmem [shape: f32[1,128], index: 4, kind: input, shape index: {}]   ;;  %s1064_s5 = inlined_call_operand.vmem [shape: f32[128,10], index: 5, kind: input, shape index: {}]   ;;  %s1065_s6 = inlined_call_operand.vmem [shape: f32[1,10], index: 6, kind: input, shape index: {}]   ;;  %s1066_s7 = inlined_call_operand.vmem [shape: f32[16,8], index: 7, kind: output, shape index: {}]  }
   0x1 LB: > { %s634_s25 = sadd.s32 4294967295, %s845_s24   ;;  %p638_p0 = scmp.ge.s32.totalorder %s845_s24, 1  ;;  %s845_s24 = sphi %s894_s24, %s17_s24  }
   0x2   : > { %p236_p1 = scmp.lt.s32.totalorder %s845_s24, 3 }
   0x4   : > { %p237_p2 = pnand %p638_p0, %p236_p1 }
   0x5   : > { %v275_v0 = vld [vmem:[%s1060_s1] sm:$0xff] (!%p237_p2)  ;;  %v276_v1 = vld [vmem:[%s1060_s1 + $0x8] sm:$0xff] (!%p237_p2)  ;;  %v277_v2 = vld [vmem:[%s1060_s1 + $0x10] sm:$0xff] (!%p237_p2)  ;;  %v847_v3 = vmov (!%p237_p2), 0.0|0.0   ;;  %vm848_vm0 = vmmov (!%p237_p2), 0   ;;  %v849_v6 = vmov (!%p237_p2), 0.0  }
   0x6   : > { %240 = sbr.rel (%p237_p2) target bundleno = 1041 (0x411), region = 48  ;;  %767 = vmatprep.subr.bf16.mxu0 (!%p237_p2), %v847_v3  ;;  %v768_v4 = vpack.c.bf16 (!%p237_p2), %v276_v1, %v275_v0  ;;  %v278_v5 = vld [vmem:[%s1060_s1 + $0x18] sm:$0xff] (!%p237_p2)  ;;  %694 = vmatprep.mubr.msk.f32.mxu0 (!%p237_p2), %vm848_vm0, %v849_v6  ;;  %p266_p3 = scmp.lt.s32.totalorder (!%p237_p2), %s634_s25, 1  ;;  %v361_v7 = vld [vmem:[%s1062_s3] sm:$0xff] (!%p237_p2)  ;;  %v362_v8 = vld [vmem:[%s1062_s3 + $0x8] sm:$0xff] (!%p237_p2)  ;;  %vm286_vm1 = vcmask (!%p237_p2), 261120  }
   0x7   : > { %773 = vmatprep.subr.bf16.mxu1 (!%p237_p2), %v847_v3  ;;  %v774_v9 = vpack.c.bf16 (!%p237_p2), %v362_v8, %v361_v7  ;;  %v363_v10 = vld [vmem:[%s1062_s3 + $0x10] sm:$0xff] (!%p237_p2)  ;;  %v364_v11 = vld [vmem:[%s1062_s3 + $0x18] sm:$0xff] (!%p237_p2)  ;;  %729 = vmatprep.mubr.msk.f32.mxu1 (!%p237_p2), %vm848_vm0, %v849_v6  ;;  %v771_v12 = vpack.c.bf16 (!%p237_p2), %v278_v5, %v277_v2  ;;  %v365_v14 = vld [vmem:[%s1062_s3 + $0x20] sm:$0xff] (!%p237_p2)  ;;  %s851_s27 = smov (!%p237_p2), 123   ;;  %v852_v8 = vmov (!%p237_p2), 4   ;;  %vm554_vm2 = vcmask (!%p237_p2), 31744  }
   0x8   : > { %769 = vmatpush3.bf16.msra.mxu0 (!%p237_p2), %v768_v4  ;;  %v777_v13 = vpack.c.bf16 (!%p237_p2), %v364_v11, %v363_v10  ;;  %v366_v15 = vld [vmem:[%s1062_s3 + $0x28] sm:$0xff] (!%p237_p2)  ;;  %v367_v18 = vld [vmem:[%s1062_s3 + $0x30] sm:$0xff] (!%p237_p2)  ;;  %v368_v19 = vld [vmem:[%s1062_s3 + $0x38] sm:$0xff] (!%p237_p2)  ;;  %837 = vset.pattern.permute.xlu0 (!%p237_p2), %v852_v8  ;;  %vm579_vm3 = vcmask (!%p237_p2), 64544  }
   0x9   : > { %770 = vmatprep.subr.bf16.mxu0 (!%p237_p2), %v847_v3  ;;  %775 = vmatpush3.bf16.msra.mxu1 (!%p237_p2), %v774_v9  ;;  %v780_v17 = vpack.c.bf16 (!%p237_p2), %v366_v15, %v365_v14  ;;  %v783_v20 = vpack.c.bf16 (!%p237_p2), %v368_v19, %v367_v18  ;;  %v369_v21 = vld [vmem:[%s1062_s3 + $0x40] sm:$0xff] (!%p237_p2)  ;;  %v370_v22 = vld [vmem:[%s1062_s3 + $0x48] sm:$0xff] (!%p237_p2)  ;;  %v371_v24 = vld [vmem:[%s1062_s3 + $0x50] sm:$0xff] (!%p237_p2) }
   0xa   : > { %776 = vmatprep.subr.bf16.mxu1 (!%p237_p2), %v847_v3  ;;  %v786_v23 = vpack.c.bf16 (!%p237_p2), %v370_v22, %v369_v21  ;;  %v372_v25 = vld [vmem:[%s1062_s3 + $0x58] sm:$0xff] (!%p237_p2)  ;;  %v373_v27 = vld [vmem:[%s1062_s3 + $0x60] sm:$0xff] (!%p237_p2)  ;;  %v374_v28 = vld [vmem:[%s1062_s3 + $0x68] sm:$0xff] (!%p237_p2) }
   0xb   : > { %v789_v26 = vpack.c.bf16 (!%p237_p2), %v372_v25, %v371_v24  ;;  %v792_v29 = vpack.c.bf16 (!%p237_p2), %v374_v28, %v373_v27  ;;  %v375_v30 = vld [vmem:[%s1062_s3 + $0x70] sm:$0xff] (!%p237_p2)  ;;  %v376_v31 = vld [vmem:[%s1062_s3 + $0x78] sm:$0xff] (!%p237_p2)  ;;  %v455_v33 = vld [vmem:[%s1064_s5] sm:$0xff] (!%p237_p2) }
   0xc   : > { %772 = vmatpush3.bf16.msra.mxu0 (!%p237_p2), %v771_v12  ;;  %v795_v32 = vpack.c.bf16 (!%p237_p2), %v376_v31, %v375_v30  ;;  %v456_v34 = vld [vmem:[%s1064_s5 + $0x8] sm:$0xff] (!%p237_p2)  ;;  %v457_v35 = vld [vmem:[%s1064_s5 + $0x10] sm:$0xff] (!%p237_p2)  ;;  %v458_v37 = vld [vmem:[%s1064_s5 + $0x18] sm:$0xff] (!%p237_p2) }
   0xd   : > { %s1068_s25 = smov (!%p266_p3, %s634_s25), 1  ;;  %778 = vmatpush3.bf16.msra.mxu1 %v777_v13  ;;  %797 = vmatprep.subr.bf16.mxu0 %v847_v3  ;;  %v798_v36 = vpack.c.bf16 %v456_v34, %v455_v33  ;;  %v801_v38 = vpack.c.bf16 %v458_v37, %v457_v35  ;;  %v459_v39 = vld [vmem:[%s1064_s5 + $0x20] sm:$0xff]  ;;  %v460_v40 = vld [vmem:[%s1064_s5 + $0x28] sm:$0xff]  ;;  %v461_v42 = vld [vmem:[%s1064_s5 + $0x30] sm:$0xff] }
   0xe   : > { %s639_s19 = sshll.u32 %s1068_s25, 3  ;;  %779 = vmatprep.subr.bf16.mxu1 %v847_v3  ;;  %v804_v41 = vpack.c.bf16 %v460_v40, %v459_v39  ;;  %v462_v43 = vld [vmem:[%s1064_s5 + $0x38] sm:$0xff]  ;;  %v463_v45 = vld [vmem:[%s1064_s5 + $0x40] sm:$0xff]  ;;  %v464_v46 = vld [vmem:[%s1064_s5 + $0x48] sm:$0xff] }
   0xf   : > { %s269_s28 = scalar_lea.vmem %s1059_s0, %s639_s19  ;;  %v807_v44 = vpack.c.bf16 %v462_v43, %v461_v42  ;;  %v810_v47 = vpack.c.bf16 %v464_v46, %v463_v45  ;;  %v465_v48 = vld [vmem:[%s1064_s5 + $0x50] sm:$0xff]  ;;  %v466_v49 = vld [vmem:[%s1064_s5 + $0x58] sm:$0xff]  ;;  %v467_v51 = vld [vmem:[%s1064_s5 + $0x60] sm:$0xff]  ;;  %s273_s8 = scalar_lea.vmem %s1066_s7, %s639_s19 }
  0x10   : > { %v274_v16 = vld [vmem:[%s269_s28] sm:$0xff]  ;;  %v813_v50 = vpack.c.bf16 %v466_v49, %v465_v48  ;;  %v468_v52 = vld [vmem:[%s1064_s5 + $0x68] sm:$0xff]  ;;  %v469_v59 = vld [vmem:[%s1064_s5 + $0x70] sm:$0xff]  ;;  %s853_s28 = smov 127  }
  0x11   : > { %695 = vmatmul.mubr.msk.f32.vlgmr.msra.gmra.mrb[0].mxu0 %vm286_vm1, %v274_v16  ;;  %781 = vmatpush3.bf16.msra.mxu1 %v780_v17  ;;  %v816_v53 = vpack.c.bf16 %v468_v52, %v467_v51  ;;  %v641_v54 = vld [vmem:[%s1061_s2] ss:$0 sm:$0xff]  ;;  %v470_v60 = vld [vmem:[%s1064_s5 + $0x78] sm:$0xff] }
  0x12   : > { %764 = vmatprep.mubr.msk.f32.mxu0 %vm848_vm0, %v849_v6  ;;  %782 = vmatprep.subr.bf16.mxu1 %v847_v3  ;;  %v819_v61 = vpack.c.bf16 %v470_v60, %v469_v59  ;;  %v643_v62 = vld [vmem:[%s1063_s4] ss:$0 sm:$0xff] }
  0x13   : > { %799 = vmatpush3.bf16.msra.mxu0 %v798_v36  ;;  %v644_v4 = vld [vmem:[%s1065_s6] ss:$0 sm:$0xff] }
  0x14   : > { %800 = vmatprep.subr.bf16.mxu0 %v847_v3 }
  0x15   : > { %784 = vmatpush3.bf16.msra.mxu1 %v783_v20 }
  0x16   : > { %785 = vmatprep.subr.bf16.mxu1 %v847_v3 }
  0x17   : > { %802 = vmatpush3.bf16.msra.mxu0 %v801_v38 }
  0x18   : > { %803 = vmatprep.subr.bf16.mxu0 %v847_v3 }
  0x19   : > { %787 = vmatpush3.bf16.msra.mxu1 %v786_v23 }
  0x1a   : > { %788 = vmatprep.subr.bf16.mxu1 %v847_v3 }
  0x1b   : > { %805 = vmatpush3.bf16.msra.mxu0 %v804_v41 }
  0x1c   : > { %806 = vmatprep.subr.bf16.mxu0 %v847_v3 }
  0x1d   : > { %790 = vmatpush3.bf16.msra.mxu1 %v789_v26 }
  0x1e   : > { %791 = vmatprep.subr.bf16.mxu1 %v847_v3 }
  0x1f   : > { %808 = vmatpush3.bf16.msra.mxu0 %v807_v44 }
  0x20   : > { %809 = vmatprep.subr.bf16.mxu0 %v847_v3 }
  0x21   : > { %793 = vmatpush3.bf16.msra.mxu1 %v792_v29 }
  0x22   : > { %794 = vmatprep.subr.bf16.mxu1 %v847_v3 }
  0x23   : > { %811 = vmatpush3.bf16.msra.mxu0 %v810_v47 }
  0x24   : > { %812 = vmatprep.subr.bf16.mxu0 %v847_v3 }
  0x25   : > { %796 = vmatpush3.bf16.msra.mxu1 %v795_v32 }
  0x27   : > { %814 = vmatpush3.bf16.msra.mxu0 %v813_v50 }
  0x28   : > { %815 = vmatprep.subr.bf16.mxu0 %v847_v3 }
  0x2b   : > { %817 = vmatpush3.bf16.msra.mxu0 %v816_v53 }
  0x2c   : > { %818 = vmatprep.subr.bf16.mxu0 %v847_v3  ;;  %v850_v3 = vmov 9  }
  0x2d   : > { %836 = vset.pattern.permute.xlu1 %v850_v3 }
  0x2f   : > { %820 = vmatpush3.bf16.msra.mxu0 %v819_v61 }
  0xe4   : > { %v356_v55 = vpop.f32.mrb[0].mxu0 }
  0xe5   : > { %v357_v56 = vadd.f32 %v641_v54, %v356_v55  ;;  %v696_v57 = vpop.f32.mrb[1].mxu0 }
  0xe7   : > { %v360_v58 = vmax.f32 %v357_v56, 0.0 }
  0xe9   : > { %730 = vmatmul.mubr.f32.vlgmr.msra.gmra.mrb[0].mxu1 %v360_v58 }
 0x1bc   : > { %v450_v63 = vpop.f32.mrb[0].mxu1 }
 0x1bd   : > { %v451_v0 = vadd.f32 %v643_v62, %v450_v63  ;;  %v731_v1 = vpop.f32.mrb[1].mxu1 }
 0x1bf   : > { %v454_v2 = vmax.f32 %v451_v0, 0.0 }
 0x1c1   : > { %765 = vmatmul.mubr.f32.vlgmr.msra.gmra.mrb[2].mxu0 %v454_v2 }
 0x294   : > { %v544_v5 = vpop.f32.mrb[2].mxu0 }
 0x295   : > { %v545_v6 = vadd.f32 %v644_v4, %v544_v5  ;;  %v766_v7 = vpop.f32.mrb[3].mxu0 }
 0x297   : > { %563 = vperm.xlu1 %836, %v545_v6   ;;  %567 = vrot.lane.b32.xlu0 %v545_v6, %s851_s27  ;;  %v555_v9 = vsel %vm554_vm2, %v545_v6, 0.0 }
 0x2bb   : > { %556 = vadd.xlane.f32.xlu1 %v555_v9 }
 0x309   : > { %v568_v10 = vpop.permute.xlu0 %567 }
 0x30a   : > { %v570_v11 = vsel %vm554_vm2, %v568_v10, 0.0 }
 0x30b   : > { %571 = vadd.xlane.f32.xlu0 %v570_v11 }
 0x316   : > { %v564_v12 = vpop.permute.xlu1 %563 }
 0x317   : > { %v566_v14 = vadd.f32 %v564_v12, %v545_v6 }
 0x321   : > { %550 = vperm.xlu0 %837, %v545_v6  }
 0x325   : > { %838 = vset.pattern.permute.xlu0 %v850_v3 }
 0x348   : > { %v557_v17 = vpop.xlane.xlu1 %556 }
 0x349   : > { %v559_v19 = vmul.f32 0.25, %v557_v17 }
 0x398   : > { %v572_v13 = vpop.xlane.xlu0 %571 }
 0x399   : > { %v573_v15 = vmul.f32 0.25, %v572_v13 }
 0x39b   : > { %v574_v16 = vsub.f32 %v566_v14, %v573_v15 }
 0x39d   : > { %576 = vrot.lane.b32.xlu1 %v574_v16, %s853_s28 }
 0x3a0   : > { %v551_v18 = vpop.permute.xlu0 %550 }
 0x3a1   : > { %v553_v20 = vadd.f32 %v551_v18, %v545_v6 }
 0x3a3   : > { %v560_v21 = vsub.f32 %v553_v20, %v559_v19 }
 0x3a5   : > { %561 = vst.msk [vmem:[%s273_s8] sm:$0xff] %vm554_vm2, %v560_v21 }
 0x40f   : > { %v577_v22 = vpop.permute.xlu1 %576 }
 0x410   : > { %580 = vst.msk [vmem:[%s273_s8] sm:$0xff] %vm579_vm3, %v577_v22 }
 0x411 PF: > { %s17_s24 = sadd.s32 1, %s845_s24  }
 0x412   : > { %p14_p4 = scmp.ge.s32.totalorder %s17_s24, 4  }
 0x414   :  { %16 = sbr.rel (!%p14_p4) target bundleno = 1 (0x1), region = 78 }

</bundles_post_ra>
